<compile_context>
chip_gen: v7x
topology: tpu7x:2x2x1
jax: 0.10.0
libtpu: 0.0.40
codegen_flags: <defaults>
</compile_context>

<pallas_src>
import functools

import numpy as np

import jax
import jax.numpy as jnp
from jax.experimental import pallas as pl
from jax.experimental.pallas import tpu as pltpu

EPS = 1e-8


def _round_up(n, m):
    return (n + m - 1) // m * m


# ----------------------------------------------------------------------------
# Fused DepthConv2d kernel (one batch element per grid step)
# ----------------------------------------------------------------------------
def _depthconv2d_kernel(alpha_ref, x_ref, conv_w_ref, pcv_ref, dconv_w_ref,
                        rs_w_ref, rs_b_ref, m1_ref, m2_ref,
                        out_ref, r1_ref,
                        *, H, W, Ho, Wo, Wp, K, d, mm_dtype):
    C = conv_w_ref.shape[0]                      # hidden channels
    Nout = m2_ref.shape[1]                       # lane-padded Ho*Wp

    a1 = alpha_ref[0]                            # PReLU alphas (SMEM scalars)
    a2 = alpha_ref[1]
    mask1 = m1_ref[...]                          # (1, Npad) {0,1} valid lanes
    mask2 = m2_ref[...]                          # (1, Nout) {0,1} valid lanes

    pcv = pcv_ref[...]                           # (C, 6) packed per-chan vecs
    conv_b = pcv[:, 0:1]
    g1, b1 = pcv[:, 1:2], pcv[:, 2:3]
    dconv_b = pcv[:, 3:4]
    g2, b2 = pcv[:, 4:5], pcv[:, 5:6]

    # ---- 1x1 conv: one MXU matmul (channels on sublanes, padded flat
    #      spatial on lanes) + PReLU -----------------------------------------
    c1 = jnp.dot(conv_w_ref[...], x_ref[0],
                 preferred_element_type=jnp.float32)             # (C, Npad)
    c1 = c1 + conv_b
    c1 = jnp.where(c1 >= 0.0, c1, a1 * c1)                       # PReLU #1

    # ---- GroupNorm(1, C), two-pass masked stats over the H*W valid lanes ---
    n1 = float(C * H * W)
    mean1 = jnp.sum(c1 * mask1) / n1
    cen1 = (c1 - mean1) * mask1
    var1 = jnp.sum(cen1 * cen1) / n1
    # multiply by mask1 so the pad lanes are exactly zero (zero-padded image
    # for the depthwise conv, matching nn.Conv2d padding semantics)
    r1 = (cen1 * jax.lax.rsqrt(var1 + EPS) * g1 + b1) * mask1
    r1_ref[...] = r1                             # ONE lane-dense VMEM store

    # ---- depthwise (2, K) dilated conv: 2*K statically shifted, lane-dense
    #      windows loaded straight from the r1 scratch ------------------------
    dw = dconv_w_ref[...]                                        # (C, 2*K) f32
    acc = None
    for a in range(2):                                           # static taps
        for j in range(K):
            off = a * d * Wp + j * d                             # static int
            win = r1_ref[:, off:off + Nout]                      # load slot
            term = win * dw[:, a * K + j:a * K + j + 1]
            acc = term if acc is None else acc + term
    acc = acc + dconv_b                                          # (C, Nout)

    # ---- PReLU + GroupNorm(1, C) over the Ho*Wo valid output lanes ----------
    dc = jnp.where(acc >= 0.0, acc, a2 * acc)                    # PReLU #2
    n2 = float(C * Ho * Wo)
    mean2 = jnp.sum(dc * mask2) / n2
    cen2 = (dc - mean2) * mask2
    var2 = jnp.sum(cen2 * cen2) / n2
    r2 = cen2 * jax.lax.rsqrt(var2 + EPS) * g2 + b2              # (C, Nout)

    # ---- fused residual [+ skip] 1x1 conv: ONE stacked MXU matmul -----------
    out = jnp.dot(rs_w_ref[...], r2.astype(mm_dtype),
                  preferred_element_type=jnp.float32) + rs_b_ref[...]
    out_ref[0] = out.astype(out_ref.dtype)


def depthconv2d_forward(x, params, *, kernel, dilation, padding, skip=True,
                        matmul_dtype=jnp.bfloat16):
    """DepthConv2d forward (non-causal). x: (B, Cin, H, W) NCHW.

    Returns (residual, skip) [or residual only], each (B, Cin, Ho, Wo) with
    Ho = H + 2*padding - dilation, Wo = W + 2*padding - dilation*(kernel-1),
    matching the literal PyTorch nn.Conv2d output shape.
    """
    B, Cin, H, W = x.shape
    C = params["conv_w"].shape[0]
    K, d, p = kernel, dilation, padding
    Hp, Wp = H + 2 * p, W + 2 * p
    Ho, Wo = Hp - d, Wp - d * (K - 1)
    assert Ho >= 1 and Wo >= 1, "kernel/dilation/padding leave no output"

    f32 = jnp.float32
    Nout = _round_up(Ho * Wp, 128)                         # lane-dense output
    Npad = _round_up(d * Wp + (K - 1) * d + Nout, 128)     # padded flat input

    # Zero-padded + flattened input built once by XLA in the wrapper; the
    # kernel never scatters rows into a pad buffer.
    xp = jnp.pad(x.astype(f32), ((0, 0), (0, 0), (p, p), (p, p)))
    xf = xp.reshape(B, Cin, Hp * Wp)
    xf = jnp.pad(xf, ((0, 0), (0, 0), (0, Npad - Hp * Wp))).astype(matmul_dtype)

    # Valid-lane masks (compile-time constants, tiny)
    hh, ww = np.arange(Hp)[:, None], np.arange(Wp)[None, :]
    v1 = ((hh >= p) & (hh < p + H) & (ww >= p) & (ww < p + W))
    m1 = np.zeros((1, Npad), np.float32)
    m1[0, :Hp * Wp] = v1.reshape(-1).astype(np.float32)
    v2 = np.tile((np.arange(Wp) < Wo).astype(np.float32), (Ho, 1))
    m2 = np.zeros((1, Nout), np.float32)
    m2[0, :Ho * Wp] = v2.reshape(-1)
    mask1, mask2 = jnp.asarray(m1), jnp.asarray(m2)

    # Weights / packed per-channel vectors
    conv_w = params["conv_w"].astype(matmul_dtype)                  # (C, Cin)
    pcv = jnp.stack([params["conv_b"], params["reg1_g"], params["reg1_b"],
                     params["dconv_b"], params["reg2_g"], params["reg2_b"]],
                    axis=1).astype(f32)                             # (C, 6)
    dconv_w = params["dconv_w"].reshape(C, 2 * K).astype(f32)       # (C, 2K)
    if skip:
        rs_w = jnp.concatenate([params["res_w"], params["skip_w"]], axis=0)
        rs_b = jnp.concatenate([params["res_b"], params["skip_b"]], axis=0)
    else:
        rs_w, rs_b = params["res_w"], params["res_b"]
    OutC = rs_w.shape[0]                                            # Cin or 2*Cin
    rs_w = rs_w.astype(matmul_dtype)                                # (OutC, C)
    rs_b = rs_b.reshape(OutC, 1).astype(f32)
    alphas = jnp.asarray([params["prelu1"], params["prelu2"]], f32)

    kern = functools.partial(_depthconv2d_kernel, H=H, W=W, Ho=Ho, Wo=Wo,
                             Wp=Wp, K=K, d=d, mm_dtype=matmul_dtype)

    mm_bytes = jnp.dtype(matmul_dtype).itemsize
    flops = int(B * (2 * C * Cin * Npad + 2 * (2 * K) * C * Nout
                     + 2 * OutC * C * Nout + 16 * C * (Npad + Nout)))
    bytes_accessed = int(B * Cin * Npad * mm_bytes + B * OutC * Nout * 4
                         + (C * Cin + OutC * C) * mm_bytes
                         + (C * 6 + C * 2 * K + OutC + Npad + Nout) * 4)
    vmem_est = (2 * (Cin * Npad * mm_bytes + OutC * Nout * 4)      # in/out x2
                + C * Npad * 4                                     # r1 scratch
                + 2 * ((C * Cin + OutC * C) * mm_bytes
                       + (C * 6 + C * 2 * K + OutC + Npad + Nout) * 4))
    vmem_limit = int(min(max(4 * vmem_est, 16 * 2 ** 20), 48 * 2 ** 20))

    out = pl.pallas_call(
        kern,
        out_shape=jax.ShapeDtypeStruct((B, OutC, Nout), f32),
        grid=(B,),
        in_specs=[
            pl.BlockSpec(memory_space=pltpu.MemorySpace.SMEM),     # alphas
            pl.BlockSpec((1, Cin, Npad), lambda i: (i, 0, 0)),     # x (flat pad)
            pl.BlockSpec((C, Cin), lambda i: (0, 0)),              # conv_w
            pl.BlockSpec((C, 6), lambda i: (0, 0)),                # packed vecs
            pl.BlockSpec((C, 2 * K), lambda i: (0, 0)),            # dconv_w
            pl.BlockSpec((OutC, C), lambda i: (0, 0)),             # res|skip W
            pl.BlockSpec((OutC, 1), lambda i: (0, 0)),             # res|skip b
            pl.BlockSpec((1, Npad), lambda i: (0, 0)),             # mask1
            pl.BlockSpec((1, Nout), lambda i: (0, 0)),             # mask2
        ],
        out_specs=pl.BlockSpec((1, OutC, Nout), lambda i: (i, 0, 0)),
        scratch_shapes=[pltpu.VMEM((C, Npad), f32)],               # r1 scratch
        compiler_params=pltpu.CompilerParams(
            dimension_semantics=("parallel",),
            vmem_limit_bytes=vmem_limit),
        cost_estimate=pl.CostEstimate(flops=flops, transcendentals=4 * B,
                                      bytes_accessed=bytes_accessed),
    )(alphas, xf, conv_w, pcv, dconv_w, rs_w, rs_b, mask1, mask2)

    out = out[:, :, :Ho * Wp].reshape(B, OutC, Ho, Wp)[:, :, :, :Wo]
    if skip:
        return out[:, :Cin], out[:, Cin:]
    return out


# ----------------------------------------------------------------------------
# Parameter init (deterministic, synthetic) + pure-JAX reference
# ----------------------------------------------------------------------------
def init_params(key, input_channel, hidden_channel, kernel, *, skip=True):
    ks = jax.random.split(key, 8)

    def nrm(k, shape, scale=0.1):
        return scale * jax.random.normal(k, shape, jnp.float32)

    params = {
        "conv_w": nrm(ks[0], (hidden_channel, input_channel)),
        "conv_b": nrm(ks[1], (hidden_channel,), 0.01),
        "prelu1": 0.25,                                  # PyTorch PReLU default
        "reg1_g": jnp.ones((hidden_channel,), jnp.float32),
        "reg1_b": jnp.zeros((hidden_channel,), jnp.float32),
        "dconv_w": nrm(ks[2], (hidden_channel, 2, kernel)),
        "dconv_b": nrm(ks[3], (hidden_channel,), 0.01),
        "prelu2": 0.25,
        "reg2_g": jnp.ones((hidden_channel,), jnp.float32),
        "reg2_b": jnp.zeros((hidden_channel,), jnp.float32),
        "res_w": nrm(ks[4], (input_channel, hidden_channel)),
        "res_b": nrm(ks[5], (input_channel,), 0.01),
    }
    if skip:
        params["skip_w"] = nrm(ks[6], (input_channel, hidden_channel))
        params["skip_b"] = nrm(ks[7], (input_channel,), 0.01)
    return params


def depthconv2d_reference(x, params, *, kernel, dilation, padding, skip=True):
    """Pure-JAX (XLA) reference mirroring the PyTorch module (non-causal)."""
    hp = jax.lax.Precision.HIGHEST
    K, d, p = kernel, dilation, padding
    Chid = params["conv_w"].shape[0]

    def pw(w, b, z):
        return (jnp.einsum("oc,bchw->bohw", w, z, precision=hp)
                + b[None, :, None, None])

    def gn(z, g, b):
        mean = jnp.mean(z, axis=(1, 2, 3), keepdims=True)
        var = jnp.mean(jnp.square(z - mean), axis=(1, 2, 3), keepdims=True)
        zn = (z - mean) / jnp.sqrt(var + EPS)
        return zn * g[None, :, None, None] + b[None, :, None, None]

    def prelu(z, a):
        return jnp.where(z >= 0.0, z, a * z)

    c1 = pw(params["conv_w"], params["conv_b"], x)
    r1 = gn(prelu(c1, params["prelu1"]), params["reg1_g"], params["reg1_b"])
    dc = jax.lax.conv_general_dilated(
        r1, params["dconv_w"][:, None, :, :],
        window_strides=(1, 1), padding=((p, p), (p, p)),
        rhs_dilation=(d, d),
        dimension_numbers=("NCHW", "OIHW", "NCHW"),
        feature_group_count=Chid, precision=hp,
    ) + params["dconv_b"][None, :, None, None]
    r2 = gn(prelu(dc, params["prelu2"]), params["reg2_g"], params["reg2_b"])
    res = pw(params["res_w"], params["res_b"], r2)
    if skip:
        return res, pw(params["skip_w"], params["skip_b"], r2)
    return res


if __name__ == "__main__":
    key = jax.random.PRNGKey(0)
    kx, kp = jax.random.split(key)

    B, Cin, H, W = 2, 4, 8, 16
    hidden, K, dilation = 16, 3, 2
    padding = dilation                        # typical TCN usage: padding == d

    x = jax.random.normal(kx, (B, Cin, H, W), jnp.float32)
    params = init_params(kp, Cin, hidden, K, skip=True)

    ref_res, ref_skip = depthconv2d_reference(
        x, params, kernel=K, dilation=dilation, padding=padding, skip=True)

    Ho = H + 2 * padding - dilation
    Wo = W + 2 * padding - dilation * (K - 1)

    # f32 MXU operands: tight correctness check
    res, sk = depthconv2d_forward(x, params, kernel=K, dilation=dilation,
                                  padding=padding, skip=True,
                                  matmul_dtype=jnp.float32)
    res, sk = jax.block_until_ready((res, sk))
    assert res.shape == (B, Cin, Ho, Wo), res.shape
    assert sk.shape == (B, Cin, Ho, Wo), sk.shape
    assert bool(jnp.all(jnp.isfinite(res))) and bool(jnp.all(jnp.isfinite(sk)))
    assert jnp.allclose(res, ref_res, atol=1e-2, rtol=1e-2), \
        float(jnp.max(jnp.abs(res - ref_res)))
    assert jnp.allclose(sk, ref_skip, atol=1e-2, rtol=1e-2), \
        float(jnp.max(jnp.abs(sk - ref_skip)))

    # default bf16 MXU operands (v6e/v7x fast path): looser sanity check
    res_bf, sk_bf = depthconv2d_forward(x, params, kernel=K, dilation=dilation,
                                        padding=padding, skip=True)
    res_bf, sk_bf = jax.block_until_ready((res_bf, sk_bf))
    assert jnp.allclose(res_bf, ref_res, atol=3e-2, rtol=3e-2), \
        float(jnp.max(jnp.abs(res_bf - ref_res)))
    assert jnp.allclose(sk_bf, ref_skip, atol=3e-2, rtol=3e-2), \
        float(jnp.max(jnp.abs(sk_bf - ref_skip)))

    print("KERNEL_OK")
</pallas_src>

<mosaic_0001>
module attributes {stable_mosaic.version = 11 : i64} {
  func.func @_depthconv2d_kernel(%arg0: i32, %arg1: memref<2xf32, #tpu.memory_space<smem>>, %arg2: memref<1x4x384xf32, #tpu.memory_space<vmem>>, %arg3: memref<16x4xf32, #tpu.memory_space<vmem>>, %arg4: memref<16x6xf32, #tpu.memory_space<vmem>>, %arg5: memref<16x6xf32, #tpu.memory_space<vmem>>, %arg6: memref<8x16xf32, #tpu.memory_space<vmem>>, %arg7: memref<8x1xf32, #tpu.memory_space<vmem>>, %arg8: memref<1x384xf32, #tpu.memory_space<vmem>>, %arg9: memref<1x256xf32, #tpu.memory_space<vmem>>, %arg10: memref<1x8x256xf32, #tpu.memory_space<vmem>>, %arg11: memref<16x384xf32, #tpu.memory_space<vmem>>) attributes {dimension_semantics = [#tpu.dimension_semantics<parallel>], iteration_bounds = array<i64: 2>, scalar_prefetch = 0 : i64, scratch_operands = 1 : i64, tpu.core_type = #tpu.core_type<tc>, window_params = [{transform_indices = @transform_0, window_bounds = array<i64: 2>}, {transform_indices = @transform_1, window_bounds = array<i64: 1, 4, 384>}, {pipeline_mode = #tpu.pipeline_mode<synchronous>, transform_indices = @transform_2, window_bounds = array<i64: 16, 4>}, {pipeline_mode = #tpu.pipeline_mode<synchronous>, transform_indices = @transform_3, window_bounds = array<i64: 16, 6>}, {pipeline_mode = #tpu.pipeline_mode<synchronous>, transform_indices = @transform_4, window_bounds = array<i64: 16, 6>}, {pipeline_mode = #tpu.pipeline_mode<synchronous>, transform_indices = @transform_5, window_bounds = array<i64: 8, 16>}, {pipeline_mode = #tpu.pipeline_mode<synchronous>, transform_indices = @transform_6, window_bounds = array<i64: 8, 1>}, {pipeline_mode = #tpu.pipeline_mode<synchronous>, transform_indices = @transform_7, window_bounds = array<i64: 1, 384>}, {pipeline_mode = #tpu.pipeline_mode<synchronous>, transform_indices = @transform_8, window_bounds = array<i64: 1, 256>}, {transform_indices = @transform_9, window_bounds = array<i64: 1, 8, 256>}]} {
    %c0 = arith.constant 0 : index
    %0 = memref.load %arg1[%c0] : memref<2xf32, #tpu.memory_space<smem>>
    %c1 = arith.constant 1 : index
    %1 = memref.load %arg1[%c1] : memref<2xf32, #tpu.memory_space<smem>>
    %c0_0 = arith.constant 0 : index
    %c0_1 = arith.constant 0 : index
    %2 = vector.load %arg8[%c0_0, %c0_1] : memref<1x384xf32, #tpu.memory_space<vmem>>, vector<1x384xf32>
    %c0_2 = arith.constant 0 : index
    %c0_3 = arith.constant 0 : index
    %3 = vector.load %arg9[%c0_2, %c0_3] : memref<1x256xf32, #tpu.memory_space<vmem>>, vector<1x256xf32>
    %c0_4 = arith.constant 0 : index
    %c0_5 = arith.constant 0 : index
    %4 = vector.load %arg4[%c0_4, %c0_5] : memref<16x6xf32, #tpu.memory_space<vmem>>, vector<16x6xf32>
    %5 = vector.extract_strided_slice %4 {offsets = [0, 0], sizes = [16, 1], strides = [1, 1]} : vector<16x6xf32> to vector<16x1xf32>
    %6 = vector.extract_strided_slice %4 {offsets = [0, 1], sizes = [16, 1], strides = [1, 1]} : vector<16x6xf32> to vector<16x1xf32>
    %7 = vector.extract_strided_slice %4 {offsets = [0, 2], sizes = [16, 1], strides = [1, 1]} : vector<16x6xf32> to vector<16x1xf32>
    %8 = vector.extract_strided_slice %4 {offsets = [0, 3], sizes = [16, 1], strides = [1, 1]} : vector<16x6xf32> to vector<16x1xf32>
    %9 = vector.extract_strided_slice %4 {offsets = [0, 4], sizes = [16, 1], strides = [1, 1]} : vector<16x6xf32> to vector<16x1xf32>
    %10 = vector.extract_strided_slice %4 {offsets = [0, 5], sizes = [16, 1], strides = [1, 1]} : vector<16x6xf32> to vector<16x1xf32>
    %c0_6 = arith.constant 0 : index
    %c0_7 = arith.constant 0 : index
    %11 = vector.load %arg3[%c0_6, %c0_7] : memref<16x4xf32, #tpu.memory_space<vmem>>, vector<16x4xf32>
    %c0_8 = arith.constant 0 : index
    %c0_9 = arith.constant 0 : index
    %c0_10 = arith.constant 0 : index
    %12 = vector.load %arg2[%c0_8, %c0_9, %c0_10] : memref<1x4x384xf32, #tpu.memory_space<vmem>>, vector<1x4x384xf32>
    %13 = vector.shape_cast %12 : vector<1x4x384xf32> to vector<4x384xf32>
    %cst = arith.constant dense<0.000000e+00> : vector<16x384xf32>
    %14 = tpu.matmul %11, %13, %cst {dimension_numbers = #tpu.dot_dimension_numbers<[1], [0], [0], [1], [0, 0, 1, 1], [], []>} : vector<16x4xf32>, vector<4x384xf32>, vector<16x384xf32> -> vector<16x384xf32>
    %15 = vector.broadcast %5 : vector<16x1xf32> to vector<16x384xf32>
    %16 = arith.addf %14, %15 : vector<16x384xf32>
    %cst_11 = arith.constant 0.000000e+00 : f32
    %17 = vector.broadcast %cst_11 : f32 to vector<16x384xf32>
    %18 = arith.cmpf oge, %16, %17 : vector<16x384xf32>
    %19 = vector.broadcast %0 : f32 to vector<16x384xf32>
    %20 = arith.mulf %19, %16 : vector<16x384xf32>
    %21 = arith.select %18, %16, %20 : vector<16x384xi1>, vector<16x384xf32>
    %22 = vector.broadcast %2 : vector<1x384xf32> to vector<16x384xf32>
    %23 = arith.mulf %21, %22 : vector<16x384xf32>
    %24 = vector.shape_cast %23 : vector<16x384xf32> to vector<1x16x384xf32>
    %cst_12 = arith.constant dense<0.000000e+00> : vector<1xf32>
    %25 = vector.multi_reduction <add>, %24, %cst_12 [1, 2] : vector<1x16x384xf32> to vector<1xf32>
    %26 = vector.shape_cast %25 : vector<1xf32> to vector<1x1x1xf32>
    %27 = vector.extract %26[0, 0, 0] : f32 from vector<1x1x1xf32>
    %cst_13 = arith.constant 2.048000e+03 : f32
    %28 = arith.divf %27, %cst_13 : f32
    %29 = vector.broadcast %28 : f32 to vector<16x384xf32>
    %30 = arith.subf %21, %29 : vector<16x384xf32>
    %31 = vector.broadcast %2 : vector<1x384xf32> to vector<16x384xf32>
    %32 = arith.mulf %30, %31 : vector<16x384xf32>
    %33 = arith.mulf %32, %32 : vector<16x384xf32>
    %34 = vector.shape_cast %33 : vector<16x384xf32> to vector<1x16x384xf32>
    %cst_14 = arith.constant dense<0.000000e+00> : vector<1xf32>
    %35 = vector.multi_reduction <add>, %34, %cst_14 [1, 2] : vector<1x16x384xf32> to vector<1xf32>
    %36 = vector.shape_cast %35 : vector<1xf32> to vector<1x1x1xf32>
    %37 = vector.extract %36[0, 0, 0] : f32 from vector<1x1x1xf32>
    %cst_15 = arith.constant 2.048000e+03 : f32
    %38 = arith.divf %37, %cst_15 : f32
    %cst_16 = arith.constant 9.99999993E-9 : f32
    %39 = arith.addf %38, %cst_16 : f32
    %40 = math.rsqrt %39 : f32
    %41 = vector.broadcast %40 : f32 to vector<16x384xf32>
    %42 = arith.mulf %32, %41 : vector<16x384xf32>
    %43 = vector.broadcast %6 : vector<16x1xf32> to vector<16x384xf32>
    %44 = arith.mulf %42, %43 : vector<16x384xf32>
    %45 = vector.broadcast %7 : vector<16x1xf32> to vector<16x384xf32>
    %46 = arith.addf %44, %45 : vector<16x384xf32>
    %47 = vector.broadcast %2 : vector<1x384xf32> to vector<16x384xf32>
    %48 = arith.mulf %46, %47 : vector<16x384xf32>
    %c0_17 = arith.constant 0 : index
    %c0_18 = arith.constant 0 : index
    %49 = vector.load %arg11[%c0_17, %c0_18] : memref<16x384xf32, #tpu.memory_space<vmem>>, vector<16x384xf32>
    tpu.vector_store %arg11[%c0_17, %c0_18], %48 {strides = array<i32>} : memref<16x384xf32, #tpu.memory_space<vmem>>, vector<16x384xf32>,
    %c0_19 = arith.constant 0 : index
    %c0_20 = arith.constant 0 : index
    %50 = vector.load %arg5[%c0_19, %c0_20] : memref<16x6xf32, #tpu.memory_space<vmem>>, vector<16x6xf32>
    %c0_21 = arith.constant 0 : index
    %c0_22 = arith.constant 0 : index
    %51 = vector.load %arg11[%c0_21, %c0_22] : memref<16x384xf32, #tpu.memory_space<vmem>>, vector<16x256xf32>
    %52 = vector.extract_strided_slice %50 {offsets = [0, 0], sizes = [16, 1], strides = [1, 1]} : vector<16x6xf32> to vector<16x1xf32>
    %53 = vector.broadcast %52 : vector<16x1xf32> to vector<16x256xf32>
    %54 = arith.mulf %51, %53 : vector<16x256xf32>
    %c0_23 = arith.constant 0 : index
    %c2 = arith.constant 2 : index
    %55 = vector.load %arg11[%c0_23, %c2] : memref<16x384xf32, #tpu.memory_space<vmem>>, vector<16x256xf32>
    %56 = vector.extract_strided_slice %50 {offsets = [0, 1], sizes = [16, 1], strides = [1, 1]} : vector<16x6xf32> to vector<16x1xf32>
    %57 = vector.broadcast %56 : vector<16x1xf32> to vector<16x256xf32>
    %58 = arith.mulf %55, %57 : vector<16x256xf32>
    %59 = arith.addf %54, %58 : vector<16x256xf32>
    %c0_24 = arith.constant 0 : index
    %c4 = arith.constant 4 : index
    %60 = vector.load %arg11[%c0_24, %c4] : memref<16x384xf32, #tpu.memory_space<vmem>>, vector<16x256xf32>
    %61 = vector.extract_strided_slice %50 {offsets = [0, 2], sizes = [16, 1], strides = [1, 1]} : vector<16x6xf32> to vector<16x1xf32>
    %62 = vector.broadcast %61 : vector<16x1xf32> to vector<16x256xf32>
    %63 = arith.mulf %60, %62 : vector<16x256xf32>
    %64 = arith.addf %59, %63 : vector<16x256xf32>
    %c0_25 = arith.constant 0 : index
    %c40 = arith.constant 40 : index
    %65 = vector.load %arg11[%c0_25, %c40] : memref<16x384xf32, #tpu.memory_space<vmem>>, vector<16x256xf32>
    %66 = vector.extract_strided_slice %50 {offsets = [0, 3], sizes = [16, 1], strides = [1, 1]} : vector<16x6xf32> to vector<16x1xf32>
    %67 = vector.broadcast %66 : vector<16x1xf32> to vector<16x256xf32>
    %68 = arith.mulf %65, %67 : vector<16x256xf32>
    %69 = arith.addf %64, %68 : vector<16x256xf32>
    %c0_26 = arith.constant 0 : index
    %c42 = arith.constant 42 : index
    %70 = vector.load %arg11[%c0_26, %c42] : memref<16x384xf32, #tpu.memory_space<vmem>>, vector<16x256xf32>
    %71 = vector.extract_strided_slice %50 {offsets = [0, 4], sizes = [16, 1], strides = [1, 1]} : vector<16x6xf32> to vector<16x1xf32>
    %72 = vector.broadcast %71 : vector<16x1xf32> to vector<16x256xf32>
    %73 = arith.mulf %70, %72 : vector<16x256xf32>
    %74 = arith.addf %69, %73 : vector<16x256xf32>
    %c0_27 = arith.constant 0 : index
    %c44 = arith.constant 44 : index
    %75 = vector.load %arg11[%c0_27, %c44] : memref<16x384xf32, #tpu.memory_space<vmem>>, vector<16x256xf32>
    %76 = vector.extract_strided_slice %50 {offsets = [0, 5], sizes = [16, 1], strides = [1, 1]} : vector<16x6xf32> to vector<16x1xf32>
    %77 = vector.broadcast %76 : vector<16x1xf32> to vector<16x256xf32>
    %78 = arith.mulf %75, %77 : vector<16x256xf32>
    %79 = arith.addf %74, %78 : vector<16x256xf32>
    %80 = vector.broadcast %8 : vector<16x1xf32> to vector<16x256xf32>
    %81 = arith.addf %79, %80 : vector<16x256xf32>
    %cst_28 = arith.constant 0.000000e+00 : f32
    %82 = vector.broadcast %cst_28 : f32 to vector<16x256xf32>
    %83 = arith.cmpf oge, %81, %82 : vector<16x256xf32>
    %84 = vector.broadcast %1 : f32 to vector<16x256xf32>
    %85 = arith.mulf %84, %81 : vector<16x256xf32>
    %86 = arith.select %83, %81, %85 : vector<16x256xi1>, vector<16x256xf32>
    %87 = vector.broadcast %3 : vector<1x256xf32> to vector<16x256xf32>
    %88 = arith.mulf %86, %87 : vector<16x256xf32>
    %89 = vector.shape_cast %88 : vector<16x256xf32> to vector<1x16x256xf32>
    %cst_29 = arith.constant dense<0.000000e+00> : vector<1xf32>
    %90 = vector.multi_reduction <add>, %89, %cst_29 [1, 2] : vector<1x16x256xf32> to vector<1xf32>
    %91 = vector.shape_cast %90 : vector<1xf32> to vector<1x1x1xf32>
    %92 = vector.extract %91[0, 0, 0] : f32 from vector<1x1x1xf32>
    %cst_30 = arith.constant 2.560000e+03 : f32
    %93 = arith.divf %92, %cst_30 : f32
    %94 = vector.broadcast %93 : f32 to vector<16x256xf32>
    %95 = arith.subf %86, %94 : vector<16x256xf32>
    %96 = vector.broadcast %3 : vector<1x256xf32> to vector<16x256xf32>
    %97 = arith.mulf %95, %96 : vector<16x256xf32>
    %98 = arith.mulf %97, %97 : vector<16x256xf32>
    %99 = vector.shape_cast %98 : vector<16x256xf32> to vector<1x16x256xf32>
    %cst_31 = arith.constant dense<0.000000e+00> : vector<1xf32>
    %100 = vector.multi_reduction <add>, %99, %cst_31 [1, 2] : vector<1x16x256xf32> to vector<1xf32>
    %101 = vector.shape_cast %100 : vector<1xf32> to vector<1x1x1xf32>
    %102 = vector.extract %101[0, 0, 0] : f32 from vector<1x1x1xf32>
    %cst_32 = arith.constant 2.560000e+03 : f32
    %103 = arith.divf %102, %cst_32 : f32
    %cst_33 = arith.constant 9.99999993E-9 : f32
    %104 = arith.addf %103, %cst_33 : f32
    %105 = math.rsqrt %104 : f32
    %106 = vector.broadcast %105 : f32 to vector<16x256xf32>
    %107 = arith.mulf %97, %106 : vector<16x256xf32>
    %108 = vector.broadcast %9 : vector<16x1xf32> to vector<16x256xf32>
    %109 = arith.mulf %107, %108 : vector<16x256xf32>
    %110 = vector.broadcast %10 : vector<16x1xf32> to vector<16x256xf32>
    %111 = arith.addf %109, %110 : vector<16x256xf32>
    %c0_34 = arith.constant 0 : index
    %c0_35 = arith.constant 0 : index
    %112 = vector.load %arg6[%c0_34, %c0_35] : memref<8x16xf32, #tpu.memory_space<vmem>>, vector<8x16xf32>
    %cst_36 = arith.constant dense<0.000000e+00> : vector<8x256xf32>
    %113 = tpu.matmul %112, %111, %cst_36 {dimension_numbers = #tpu.dot_dimension_numbers<[1], [0], [0], [1], [0, 0, 1, 1], [], []>} : vector<8x16xf32>, vector<16x256xf32>, vector<8x256xf32> -> vector<8x256xf32>
    %c0_37 = arith.constant 0 : index
    %c0_38 = arith.constant 0 : index
    %114 = vector.load %arg7[%c0_37, %c0_38] : memref<8x1xf32, #tpu.memory_space<vmem>>, vector<8x1xf32>
    %115 = vector.broadcast %114 : vector<8x1xf32> to vector<8x256xf32>
    %116 = arith.addf %113, %115 : vector<8x256xf32>
    %c0_39 = arith.constant 0 : index
    %c0_40 = arith.constant 0 : index
    %c0_41 = arith.constant 0 : index
    %117 = vector.load %arg10[%c0_39, %c0_40, %c0_41] : memref<1x8x256xf32, #tpu.memory_space<vmem>>, vector<1x8x256xf32>
    %118 = vector.shape_cast %117 : vector<1x8x256xf32> to vector<8x256xf32>
    %119 = vector.shape_cast %116 : vector<8x256xf32> to vector<1x8x256xf32>
    tpu.vector_store %arg10[%c0_39, %c0_40, %c0_41], %119 {strides = array<i32>} : memref<1x8x256xf32, #tpu.memory_space<vmem>>, vector<1x8x256xf32>,
    return
  }
  func.func @transform_0(%arg0: i32) -> i32 {
    %c0_i32 = arith.constant 0 : i32
    %c0_i32_0 = arith.constant 0 : i32
    return %c0_i32 : i32
  }
  func.func @transform_1(%arg0: i32) -> (i32, i32, i32) {
    %c0_i32 = arith.constant 0 : i32
    %c0_i32_0 = arith.constant 0 : i32
    %c0_i32_1 = arith.constant 0 : i32
    return %arg0, %c0_i32, %c0_i32_0 : i32, i32, i32
  }
  func.func @transform_2(%arg0: i32) -> (i32, i32) {
    %c0_i32 = arith.constant 0 : i32
    %c0_i32_0 = arith.constant 0 : i32
    %c0_i32_1 = arith.constant 0 : i32
    return %c0_i32, %c0_i32_0 : i32, i32
  }
  func.func @transform_3(%arg0: i32) -> (i32, i32) {
    %c0_i32 = arith.constant 0 : i32
    %c0_i32_0 = arith.constant 0 : i32
    %c0_i32_1 = arith.constant 0 : i32
    return %c0_i32, %c0_i32_0 : i32, i32
  }
  func.func @transform_4(%arg0: i32) -> (i32, i32) {
    %c0_i32 = arith.constant 0 : i32
    %c0_i32_0 = arith.constant 0 : i32
    %c0_i32_1 = arith.constant 0 : i32
    return %c0_i32, %c0_i32_0 : i32, i32
  }
  func.func @transform_5(%arg0: i32) -> (i32, i32) {
    %c0_i32 = arith.constant 0 : i32
    %c0_i32_0 = arith.constant 0 : i32
    %c0_i32_1 = arith.constant 0 : i32
    return %c0_i32, %c0_i32_0 : i32, i32
  }
  func.func @transform_6(%arg0: i32) -> (i32, i32) {
    %c0_i32 = arith.constant 0 : i32
    %c0_i32_0 = arith.constant 0 : i32
    %c0_i32_1 = arith.constant 0 : i32
    return %c0_i32, %c0_i32_0 : i32, i32
  }
  func.func @transform_7(%arg0: i32) -> (i32, i32) {
    %c0_i32 = arith.constant 0 : i32
    %c0_i32_0 = arith.constant 0 : i32
    %c0_i32_1 = arith.constant 0 : i32
    return %c0_i32, %c0_i32_0 : i32, i32
  }
  func.func @transform_8(%arg0: i32) -> (i32, i32) {
    %c0_i32 = arith.constant 0 : i32
    %c0_i32_0 = arith.constant 0 : i32
    %c0_i32_1 = arith.constant 0 : i32
    return %c0_i32, %c0_i32_0 : i32, i32
  }
  func.func @transform_9(%arg0: i32) -> (i32, i32, i32) {
    %c0_i32 = arith.constant 0 : i32
    %c0_i32_0 = arith.constant 0 : i32
    %c0_i32_1 = arith.constant 0 : i32
    return %arg0, %c0_i32, %c0_i32_0 : i32, i32, i32
  }
}

</mosaic_0001>

<bundles_post_ra>
// kernel: tpu_custom_call.1
= control target key start
LH: loop header
LB: loop body
LE: loop exit
PB: predicated region body
PF: predicated region fallthrough
CT: control target
= control target key end

     0   :  { %14 = vsyncpa [#allocation5], 0  ;;  %s1789_s0 = inlined_call_operand.vmem [shape: f32[2], index: 0, kind: input, shape index: {}]   ;;  %s1790_s1 = inlined_call_operand.vmem [shape: f32[2,4,384], index: 1, kind: input, shape index: {}]   ;;  %s1791_s2 = inlined_call_operand.vmem [shape: f32[16,4], index: 2, kind: input, shape index: {}]   ;;  %s1792_s3 = inlined_call_operand.vmem [shape: f32[16,6], index: 3, kind: input, shape index: {}]   ;;  %s1793_s4 = inlined_call_operand.vmem [shape: f32[16,6], index: 4, kind: input, shape index: {}]   ;;  %s1794_s5 = inlined_call_operand.vmem [shape: f32[8,16], index: 5, kind: input, shape index: {}]   ;;  %s1795_s6 = inlined_call_operand.vmem [shape: f32[8,1], index: 6, kind: input, shape index: {}]   ;;  %s1796_s7 = inlined_call_operand.vmem [shape: f32[1,384], index: 7, kind: input, shape index: {}]   ;;  %s1797_s8 = inlined_call_operand.vmem [shape: f32[1,256], index: 8, kind: input, shape index: {}]   ;;  %s1798_s9 = inlined_call_operand.hbm [shape: f32[2,8,256], index: 9, kind: output, shape index: {}]  }
   0x1   :  { %15 = vsyncpa [#allocation4], 0 }
   0x2   :  { %17 = vsyncpa [#allocation4 + $0x1], 0  ;;  %s1497_s30 = smov 0   ;;  %s1499_s10 = smov 0  }
   0x3   :  { %s1501_s11 = smov 0   ;;  %s1503_s12 = smov 0  }
   0x4 LB: > { %s1518_s13 = sadd.s32 4294967295, %s1431_s12   ;;  %s1216_s14 = sadd.s32 4294967294, %s1431_s12   ;;  %s1431_s12 = sphi %s1503_s12, %s1805_s12   ;;  %s1427_s11 = sphi %s1501_s11, %s1804_s11   ;;  %s1423_s10 = sphi %s1499_s10, %s1803_s10   ;;  %s1419_s30 = sphi %s1497_s30, %s1802_s30  }
   0x5   : > { %s1522_s15 = sadd.s32 1, %s1431_s12   ;;  %s224_s16 = sadd.s32 1, %s1427_s11 }
   0x6   : > { %s221_s17 = ssub.s32 %s1431_s12, %s1522_s15  ;;  %p234_p0 = scmp.ne.s32.totalorder %s1427_s11, %s1423_s10 }
   0x7   : > { %p222_p1 = scmp.eq.s32.totalorder %s221_s17, 0  ;;  %p235_p2 = scmp.eq.s32.totalorder %s1518_s13, 1 }
   0x8   : > { %p240_p3 = scmp.ne.s32.totalorder %s1423_s10, %s1419_s30  ;;  %p241_p4 = scmp.eq.s32.totalorder %s1216_s14, 1 }
   0x9   : > { %s1533_s18 = scalar_select %p222_p1, %s1427_s11, %s224_s16  }
   0xa   : > { %p1535_p5 = por %p235_p2, %p234_p0  ;;  %p1539_p6 = por %p241_p4, %p240_p3 }
   0xb   : > { %p1217_p7 = scmp.ge.s32.totalorder %s1431_s12, 1  ;;  %p248_p8 = scmp.lt.s32.totalorder %s1431_s12, 3 }
   0xc   : > { %p1278_p9 = scmp.eq.s32.totalorder %s1518_s13, 0  ;;  %s261_s24 = sshll.u32 %s1789_s0, 4  ;;  %s262_s24 = int_to_ptr.vmem [resolvable:$true] %s261_s24 }
   0xd   : > { %p1546_p10 = pnand %p1217_p7, %p248_p8  ;;  %s1350_s25 = scalar_lea.vmem %s262_s24, 16 }
   0xe   : > { %p1351_p13 = scmp.ne.s32.totalorder %s262_s24, %s1350_s25  ;;  %p1358_p3 = scmp.lt.s32.totalorder %s262_s24, %s262_s24 }
   0xf   : > { %p1270_p11 = pneg %p1546_p10  ;;  %p1359_p4 = scmp.lt.s32.totalorder %s1350_s25, %s1350_s25 }
  0x11   : > { %p1271_p12 = pnand %p1278_p9, %p1270_p11  ;;  %p1360_p7 = por %p1359_p4, %p1358_p3 }
  0x13   : > { %p1352_p0 = pneg %p1271_p12 }
  0x15   : > { %p1353_p1 = pnand %p1352_p0, %p1351_p13 }
  0x17   : > { %p1354_p2 = pneg %p1353_p1 }
  0x19   : > { %p1361_p8 = pnand %p1360_p7, %p1354_p2 }
  0x1b   : > { %1364 = shalt.err (!%p1361_p8)
}
  0x1c   : > { %s1433_s26 = smov [#allocation3]   ;;  %303 = sbr.rel (%p1546_p10) target bundleno = 1702 (0x6a6), region = 56 }
  0x1d   : > { %1273 = dma.vmem_to_smem (!%p1271_p12), %s262_s24, 16, %s1433_s26, [#allocation5]  }
  0x23   : > { %1410 = dma.done.wait (%p1278_p9), [#allocation5], 16  }
  0x24   : > { %1412 = vsyncadd (%p1278_p9), [#allocation5], 4294967280 }
  0x25   : > { %309 = sfence }
  0x26   : > { %p340_p11 = scmp.lt.s32.totalorder %s1518_s13, 1  ;;  %v351_v0 = vld [vmem:[%s1791_s2] sm:$0xff]  ;;  %vm368_vm0 = vcmask 31744   ;;  %v1434_v1 = vmov 0.0   ;;  %v1435_v3 = vmov 0   ;;  %v1579_v4 = vld [vmem:[%s1792_s3 + $0x8] sm:$0xff]  ;;  %v554_v9 = vlaneseq }
  0x27   : > { %1244 = vmatprep.mubr.msk.f32.mxu1 %vm368_vm0, %v351_v0  ;;  %446 = vmatprep.mubr.f32.mxu0 %v1434_v1  ;;  %v1571_v2 = vld [vmem:[%s1792_s3] sm:$0xff]  ;;  %vm375_vm1 = vcmask 1043456   ;;  %v352_v7 = vld [vmem:[%s1791_s2 + $0x8] sm:$0xff]  ;;  %s345_s28 = sld [smem:[#allocation3]]  ;;  %v1436_v56 = vmov 1   ;;  %v1437_v57 = vmov 2  }
  0x28   : > { %s341_s16 = scalar_select %p340_p11, %s1518_s13, 1  ;;  %1326 = vset.pattern.permute.xlu0 %v1435_v3  ;;  %v1591_v10 = vshrl.u32 %v554_v9, 7  ;;  %v347_v14 = vld [vmem:[%s1796_s7] sm:$0x7]  ;;  %1327 = vset.pattern.permute.xlu1 %v1436_v56  ;;  %v680_v58 = vld [vmem:[%s1793_s4 + $0x8] sm:$0xff]  ;;  %v1438_v60 = vmov 3  }
  0x29   : > { %357 = vperm.xlu0 %1326, %v1571_v2   ;;  %v679_v59 = vld [vmem:[%s1793_s4] sm:$0xff]  ;;  %v1439_v61 = vmov 4   ;;  %s1441_s29 = smov 126   ;;  %s1442_s14 = smov 124   ;;  %vm737_vm8 = vcmask 1031168   ;;  %vm782_vm9 = vcmask 1014784  }
  0x2a   : > { %s1251_s17 = smul.u32 12, %s341_s16  ;;  %v556_v13 = vsub.s32 0, %v1591_v10  ;;  %v560_v17 = vsub.s32 1, %v1591_v10  ;;  %v564_v21 = vsub.s32 2, %v1591_v10  ;;  %s1443_s16 = smov 88   ;;  %vm827_vm10 = vcmask 719872  }
  0x2b   : > { %s1445_s21 = smov 84   ;;  %vm872_vm11 = vcmask 703488   ;;  %vm917_vm12 = vcmask 687104   ;;  %s1224_s22 = sld [smem:[#allocation3 + $0x1]] }
  0x2c   : > { %s344_s25 = scalar_lea.vmem %s1790_s1, %s1251_s17  ;;  %v1601_v25 = vrot.slane %v347_v14, %v556_v13  ;;  %v1605_v28 = vrot.slane %v347_v14, %v560_v17  ;;  %v1607_v32 = vrot.slane %v347_v14, %v564_v21  ;;  %s1444_s17 = smov 86  }
  0x2d   : > { %v354_v5 = vld [vmem:[%s344_s25 + $0x8] sm:$0xf]  ;;  %v353_v6 = vld [vmem:[%s344_s25] sm:$0xff]  ;;  %362 = vperm.xlu0 %1326, %v1579_v4   ;;  %v540_v16 = vstv %s345_s28 }
  0x2e   : > { %1242 = vmatprep.subr.msk.mxu1 %vm375_vm1, %v354_v5  ;;  %v367_v8 = vcombine.high %v353_v6, %v353_v6 }
  0x2f   : > { %1243 = vmatpush3.msk.msra.mxu1 %vm375_vm1, %v354_v5 }
  0x30   : > { %1225 = vmatprep.subr.msk.mxu0 %vm375_vm1, %v367_v8  ;;  %1245 = vmatmul.mubr.msk.f32.vlgmr.msra.gmra.mrb[0].mxu1 %vm368_vm0, %v352_v7 }
  0x31   : > { %1226 = vmatpush1.msk.msra.mxu0 %vm375_vm1, %v353_v6  ;;  %1121 = vmatprep.mubr.f32.mxu1 %v1434_v1  ;;  %vm1053_vm1 = vcmask 130048  }
  0x32   : > { %1227 = vmatmul.mubr.msk.f32.vlgmr.msra.gmra.mrb[0].mxu0 %vm368_vm0, %v351_v0  ;;  %1328 = vset.pattern.permute.xlu0 %v1437_v57 }
  0x33   : > { %452 = vmatprep.mubr.f32.mxu0 %v1434_v1  ;;  %654 = vperm.xlu0 %1328, %v1571_v2  }
  0x36   : > { %1228 = vmatmul.mubr.msk.f32.gmra.mrb[2].mxu0 %vm368_vm0, %v352_v7 }
  0x37   : > { %658 = vperm.xlu0 %1328, %v1579_v4  }
  0x3b   : > { %1329 = vset.pattern.permute.xlu0 %v1436_v56 }
  0x3c   : > { %640 = vperm.xlu0 %1329, %v1571_v2  }
  0x40   : > { %710 = vperm.xlu0 %1329, %v680_v58  }
  0x44   : > { %1331 = vset.pattern.permute.xlu0 %v1438_v60 }
  0x45   : > { %796 = vperm.xlu0 %1331, %v679_v59  }
  0x49   : > { %1334 = vset.pattern.permute.xlu0 %v1439_v61 }
  0x4a   : > { %845 = vperm.xlu0 %1334, %v680_v58  }
  0x4e   : > { %1336 = vset.pattern.permute.xlu0 %v1435_v3 }
  0x4f   : > { %687 = vperm.xlu0 %1336, %v679_v59  }
  0x53   : > { %1339 = vset.pattern.permute.xlu0 %v1438_v60 }
  0x54   : > { %935 = vperm.xlu0 %1339, %v1579_v4  }
  0x58   : > { %1340 = vset.pattern.permute.xlu0 %v1439_v61 }
  0xa8   : > { %v358_v11 = vpop.permute.xlu0 %357 }
  0xac   : > { %v363_v20 = vpop.permute.xlu0 %362 }
 0x103   : > { %v1246_v12 = vpop.f32.mrb[0].mxu1 }
 0x104   : > { %v525_v15 = vpop.f32.mrb[1].mxu1  ;;  %v531_v29 = vadd.f32 %v1246_v12, %v363_v20 }
 0x105   : > { %v526_v18 = vadd.f32 %v525_v15, %v358_v11  ;;  %v448_v19 = vpop.f32.mrb[0].mxu0 }
 0x106   : > { %v449_v22 = vadd.f32 %v448_v19, %v358_v11  ;;  %v450_v23 = vpop.f32.mrb[1].mxu0  ;;  %v546_v43 = vmul.f32 %v540_v16, %v531_v29  ;;  %vm539_vm7 = vcmp.ge.f32.partialorder %v531_v29, 0.0 }
 0x107   : > { %v543_v24 = vmul.f32 %v540_v16, %v526_v18  ;;  %v451_v26 = vadd.f32 %v450_v23, %v358_v11  ;;  %vm536_vm2 = vcmp.ge.f32.partialorder %v526_v18, 0.0 }
 0x108   : > { %vm534_vm3 = vcmp.ge.f32.partialorder %v449_v22, 0.0  ;;  %v541_v27 = vmul.f32 %v540_v16, %v449_v22  ;;  %v552_v50 = vsel %vm539_vm7, %v531_v29, %v546_v43 }
 0x109   : > { %vm535_vm4 = vcmp.ge.f32.partialorder %v451_v26, 0.0  ;;  %v542_v30 = vmul.f32 %v540_v16, %v451_v26  ;;  %v454_v31 = vpop.f32.mrb[2].mxu0  ;;  %v1611_v36 = vsel %vm536_vm2, %v526_v18, %v543_v24  ;;  %v574_v53 = vmul.f32 %v1607_v32, %v552_v50 }
 0x10a   : > { %v1609_v33 = vsel %vm534_vm3, %v449_v22, %v541_v27  ;;  %v455_v34 = vadd.f32 %v454_v31, %v363_v20  ;;  %v456_v35 = vpop.f32.mrb[3].mxu0  ;;  %v571_v44 = vmul.f32 %v1607_v32, %v1611_v36 }
 0x10b   : > { %v569_v37 = vmul.f32 %v1601_v25, %v1609_v33  ;;  %v548_v38 = vsel %vm535_vm4, %v451_v26, %v542_v30  ;;  %v457_v39 = vadd.f32 %v456_v35, %v363_v20 }
 0x10c   : > { %v570_v40 = vmul.f32 %v1605_v28, %v548_v38  ;;  %vm537_vm5 = vcmp.ge.f32.partialorder %v455_v34, 0.0  ;;  %v544_v41 = vmul.f32 %v540_v16, %v455_v34 }
 0x10d   : > { %vm538_vm6 = vcmp.ge.f32.partialorder %v457_v39, 0.0  ;;  %v545_v42 = vmul.f32 %v540_v16, %v457_v39 }
 0x10e   : > { %v550_v45 = vsel %vm537_vm5, %v455_v34, %v544_v41  ;;  %v575_v46 = vadd.f32 %v570_v40, %v569_v37 }
 0x10f   : > { %v551_v47 = vsel %vm538_vm6, %v457_v39, %v545_v42  ;;  %v572_v48 = vmul.f32 %v1601_v25, %v550_v45 }
 0x110   : > { %v576_v49 = vadd.f32 %v575_v46, %v571_v44  ;;  %v573_v51 = vmul.f32 %v1605_v28, %v551_v47 }
 0x112   : > { %v577_v52 = vadd.f32 %v576_v49, %v572_v48  ;;  %v655_v48 = vpop.permute.xlu0 %654 }
 0x114   : > { %v578_v54 = vadd.f32 %v577_v52, %v573_v51 }
 0x116   : > { %v579_v55 = vadd.f32 %v578_v54, %v574_v53  ;;  %v659_v49 = vpop.permute.xlu0 %658 }
 0x118   : > { %580 = vadd.xlane.f32.xlu1 %v579_v55 }
 0x11a   : > { %v641_v55 = vpop.permute.xlu0 %640 }
 0x1a5   : > { %v581_v62 = vpop.xlane.xlu1 %580 }
 0x1a6   : > { %v582_v63 = vrot.slane %v581_v62, 4 }
 0x1a8   : > { %v583_v0 = vadd.f32 %v582_v63, %v581_v62 }
 0x1aa   : > { %v584_v1 = vrot.slane %v583_v0, 2 }
 0x1ac   : > { %v585_v5 = vadd.f32 %v584_v1, %v583_v0 }
 0x1ae   : > { %v586_v6 = vrot.slane %v585_v5, 1 }
 0x1b0   : > { %v587_v7 = vadd.f32 %v586_v6, %v585_v5 }
 0x1b2   : > { %1252 = vpush %v587_v7 }
 0x1e3   : > { %s1253_s23 = spop %1252 }
 0x1e4   : > { %s591_s24 = smul.f32 0.00048828125, %s1253_s23  ;;  %s337_s23 = sand.u32 1, %s1423_s10  }
 0x1e6   : > { %v592_v8 = vstv %s591_s24  ;;  %s1222_s24 = sshll.u32 %s337_s23, 4 }
 0x1e7   : > { %v593_v9 = vsub.f32 %v1609_v33, %v592_v8  ;;  %v594_v11 = vsub.f32 %v548_v38, %v592_v8  ;;  %v595_v12 = vsub.f32 %v1611_v36, %v592_v8  ;;  %v596_v14 = vsub.f32 %v550_v45, %v592_v8 }
 0x1e8   : > { %v597_v18 = vsub.f32 %v551_v47, %v592_v8  ;;  %v598_v20 = vsub.f32 %v552_v50, %v592_v8  ;;  %v1440_v38 = vmov 5  }
 0x1e9   : > { %v599_v15 = vmul.f32 %v593_v9, %v1601_v25  ;;  %v600_v16 = vmul.f32 %v594_v11, %v1605_v28  ;;  %v601_v19 = vmul.f32 %v595_v12, %v1607_v32  ;;  %v602_v21 = vmul.f32 %v596_v14, %v1601_v25 }
 0x1ea   : > { %v603_v24 = vmul.f32 %v597_v18, %v1605_v28  ;;  %v1640_v29 = vmul.f32 %v598_v20, %v1607_v32  ;;  %v711_v18 = vpop.permute.xlu0 %710 }
 0x1eb   : > { %v605_v22 = vmul.f32 %v599_v15, %v599_v15  ;;  %v606_v23 = vmul.f32 %v600_v16, %v600_v16  ;;  %v607_v26 = vmul.f32 %v601_v19, %v601_v19  ;;  %v608_v30 = vmul.f32 %v602_v21, %v602_v21 }
 0x1ec   : > { %v609_v33 = vmul.f32 %v603_v24, %v603_v24  ;;  %v610_v35 = vmul.f32 %v1640_v29, %v1640_v29 }
 0x1ed   : > { %v611_v27 = vadd.f32 %v606_v23, %v605_v22 }
 0x1ef   : > { %v612_v31 = vadd.f32 %v611_v27, %v607_v26 }
 0x1f1   : > { %v613_v34 = vadd.f32 %v612_v31, %v608_v30 }
 0x1f3   : > { %v614_v36 = vadd.f32 %v613_v34, %v609_v33  ;;  %v797_v34 = vpop.permute.xlu0 %796 }
 0x1f5   : > { %v615_v37 = vadd.f32 %v614_v36, %v610_v35 }
 0x1f7   : > { %616 = vadd.xlane.f32.xlu1 %v615_v37 }
 0x208   : > { %644 = vperm.xlu1 %1327, %v1579_v4  }
 0x20c   : > { %706 = vperm.xlu1 %1327, %v679_v59  }
 0x210   : > { %1330 = vset.pattern.permute.xlu1 %v1437_v57 }
 0x211   : > { %751 = vperm.xlu1 %1330, %v679_v59  }
 0x215   : > { %755 = vperm.xlu1 %1330, %v680_v58  }
 0x219   : > { %1332 = vset.pattern.permute.xlu1 %v1438_v60 }
 0x21a   : > { %800 = vperm.xlu1 %1332, %v680_v58  }
 0x21e   : > { %1333 = vset.pattern.permute.xlu1 %v1439_v61 }
 0x21f   : > { %841 = vperm.xlu1 %1333, %v679_v59  }
 0x223   : > { %1335 = vset.pattern.permute.xlu1 %v1440_v38 }
 0x224   : > { %886 = vperm.xlu1 %1335, %v679_v59  }
 0x228   : > { %890 = vperm.xlu1 %1335, %v680_v58  }
 0x22c   : > { %1337 = vset.pattern.permute.xlu1 %v1435_v3 }
 0x22d   : > { %692 = vperm.xlu1 %1337, %v680_v58  }
 0x231   : > { %1338 = vset.pattern.permute.xlu1 %v1438_v60 }
 0x232   : > { %931 = vperm.xlu1 %1338, %v1571_v2  }
 0x236   : > { %1341 = vset.pattern.permute.xlu1 %v1439_v61 }
 0x284   : > { %v617_v39 = vpop.xlane.xlu1 %616 }
 0x285   : > { %v618_v40 = vrot.slane %v617_v39, 4 }
 0x287   : > { %v619_v41 = vadd.f32 %v618_v40, %v617_v39 }
 0x288   : > { %v645_v58 = vpop.permute.xlu1 %644 }
 0x289   : > { %v620_v42 = vrot.slane %v619_v41, 2 }
 0x28b   : > { %v621_v43 = vadd.f32 %v620_v42, %v619_v41 }
 0x28c   : > { %v707_v8 = vpop.permute.xlu1 %706 }
 0x28d   : > { %v622_v44 = vrot.slane %v621_v43, 1 }
 0x28f   : > { %v623_v45 = vadd.f32 %v622_v44, %v621_v43 }
 0x291   : > { %1254 = vpush %v623_v45 }
 0x2c2   : > { %s1255_s25 = spop %1254 }
 0x2c3   : > { %s627_s26 = smul.f32 0.00048828125, %s1255_s25 }
 0x2c5   : > { %s628_s27 = sadd.f32 1e-08, %s627_s26 }
 0x2c7   : > { %v629_v46 = vstv %s628_s27 }
 0x2c8   : > { %1346 = vrsqrt.f32 %v629_v46 }
 0x2d2   : > { %v1347_v47 = vpop.eup %1346 }
 0x2d3   : > { %1256 = vpush %v1347_v47  ;;  %v846_v47 = vpop.permute.xlu0 %845 }
 0x304   : > { %s1257_s28 = spop %1256 }
 0x305   : > { %v632_v50 = vstv %s1257_s28 }
 0x306   : > { %v633_v51 = vmul.f32 %v632_v50, %v599_v15  ;;  %v634_v52 = vmul.f32 %v632_v50, %v600_v16  ;;  %v635_v53 = vmul.f32 %v632_v50, %v601_v19  ;;  %v636_v54 = vmul.f32 %v632_v50, %v602_v21 }
 0x307   : > { %v637_v59 = vmul.f32 %v632_v50, %v603_v24  ;;  %v638_v9 = vmul.f32 %v632_v50, %v1640_v29 }
 0x308   : > { %v647_v56 = vmul.f32 %v641_v55, %v633_v51  ;;  %v648_v57 = vmul.f32 %v641_v55, %v634_v52  ;;  %v649_v60 = vmul.f32 %v641_v55, %v635_v53  ;;  %v650_v61 = vmul.f32 %v645_v58, %v636_v54 }
 0x309   : > { %v651_v0 = vmul.f32 %v645_v58, %v637_v59  ;;  %v652_v19 = vmul.f32 %v645_v58, %v638_v9 }
 0x30a   : > { %v661_v62 = vadd.f32 %v655_v48, %v647_v56  ;;  %v662_v63 = vadd.f32 %v655_v48, %v648_v57  ;;  %v663_v1 = vadd.f32 %v655_v48, %v649_v60  ;;  %v664_v5 = vadd.f32 %v659_v49, %v650_v61  ;;  %v688_v60 = vpop.permute.xlu0 %687 }
 0x30b   : > { %v665_v11 = vadd.f32 %v659_v49, %v651_v0  ;;  %v666_v23 = vadd.f32 %v659_v49, %v652_v19 }
 0x30c   : > { %v1649_v6 = vmul.f32 %v661_v62, %v1601_v25  ;;  %v1652_v7 = vmul.f32 %v662_v63, %v1605_v28  ;;  %v1656_v12 = vmul.f32 %v663_v1, %v1607_v32  ;;  %v1659_v14 = vmul.f32 %v664_v5, %v1601_v25  ;;  %v752_v25 = vpop.permute.xlu1 %751 }
 0x30d   : > { %v1664_v20 = vmul.f32 %v665_v11, %v1605_v28  ;;  %v672_v27 = vmul.f32 %v666_v23, %v1607_v32 }
 0x30e   : > { %v714_v15 = vmul.f32 %v707_v8, %v1652_v7  ;;  %v713_v16 = vmul.f32 %v707_v8, %v1649_v6  ;;  %v716_v21 = vmul.f32 %v711_v18, %v1659_v14  ;;  %v715_v22 = vmul.f32 %v707_v8, %v1656_v12  ;;  %v1690_v62 = vpop.permute.xlu0 %935 }
 0x30f   : > { %v717_v24 = vmul.f32 %v711_v18, %v1664_v20  ;;  %v758_v26 = vmul.f32 %v752_v25, %v1649_v6  ;;  %v759_v28 = vmul.f32 %v752_v25, %v1652_v7  ;;  %v760_v29 = vmul.f32 %v752_v25, %v1656_v12 }
 0x310   : > { %727 = vrot.lane.b32.xlu0 %v714_v15, %s1441_s29  ;;  %725 = vrot.lane.b32.xlu1 %v713_v16, %s1441_s29  ;;  %v756_v30 = vpop.permute.xlu1 %755  ;;  %v718_v31 = vmul.f32 %v711_v18, %v672_v27  ;;  %v803_v35 = vmul.f32 %v797_v34, %v1649_v6  ;;  %v804_v32 = vmul.f32 %v797_v34, %v1652_v7 }
 0x311   : > { %v761_v33 = vmul.f32 %v756_v30, %v1659_v14  ;;  %v762_v36 = vmul.f32 %v756_v30, %v1664_v20  ;;  %v805_v37 = vmul.f32 %v797_v34, %v1656_v12  ;;  %v763_v40 = vmul.f32 %v756_v30, %v672_v27 }
 0x312   : > { %v852_v48 = vmul.f32 %v846_v47, %v1664_v20  ;;  %v851_v52 = vmul.f32 %v846_v47, %v1659_v14  ;;  %v853_v54 = vmul.f32 %v846_v47, %v672_v27 }
 0x314   : > { %731 = vrot.lane.b32.xlu0 %v716_v21, %s1441_s29  ;;  %729 = vrot.lane.b32.xlu1 %v715_v22, %s1441_s29  ;;  %v801_v39 = vpop.permute.xlu1 %800 }
 0x315   : > { %v806_v41 = vmul.f32 %v801_v39, %v1659_v14  ;;  %v807_v43 = vmul.f32 %v801_v39, %v1664_v20  ;;  %v808_v49 = vmul.f32 %v801_v39, %v672_v27  ;;  %v696_v39 = vmul.f32 %v688_v60, %v1652_v7 }
 0x318   : > { %733 = vrot.lane.b32.xlu1 %v717_v24, %s1441_s29  ;;  %770 = vrot.lane.b32.xlu0 %v758_v26, %s1442_s14  ;;  %v842_v42 = vpop.permute.xlu1 %841 }
 0x319   : > { %v848_v44 = vmul.f32 %v842_v42, %v1649_v6  ;;  %v849_v45 = vmul.f32 %v842_v42, %v1652_v7  ;;  %v850_v46 = vmul.f32 %v842_v42, %v1656_v12 }
 0x31c   : > { %772 = vrot.lane.b32.xlu1 %v759_v28, %s1442_s14  ;;  %774 = vrot.lane.b32.xlu0 %v760_v29, %s1442_s14  ;;  %v887_v50 = vpop.permute.xlu1 %886 }
 0x31d   : > { %v894_v51 = vmul.f32 %v887_v50, %v1652_v7  ;;  %v893_v53 = vmul.f32 %v887_v50, %v1649_v6  ;;  %v895_v56 = vmul.f32 %v887_v50, %v1656_v12 }
 0x320   : > { %735 = vrot.lane.b32.xlu1 %v718_v31, %s1441_s29  ;;  %776 = vrot.lane.b32.xlu0 %v761_v33, %s1442_s14  ;;  %v891_v55 = vpop.permute.xlu1 %890  ;;  %v695_v31 = vmul.f32 %v688_v60, %v1649_v6 }
 0x321   : > { %v897_v57 = vmul.f32 %v891_v55, %v1664_v20  ;;  %v896_v58 = vmul.f32 %v891_v55, %v1659_v14  ;;  %v898_v59 = vmul.f32 %v891_v55, %v672_v27 }
 0x324   : > { %778 = vrot.lane.b32.xlu1 %v762_v36, %s1442_s14  ;;  %815 = vrot.lane.b32.xlu0 %v803_v35, %s1443_s16  ;;  %v693_v61 = vpop.permute.xlu1 %692 }
 0x328   : > { %817 = vrot.lane.b32.xlu1 %v804_v32, %s1443_s16  ;;  %819 = vrot.lane.b32.xlu0 %v805_v37, %s1443_s16  ;;  %v1692_v63 = vpop.permute.xlu1 %931 }
 0x32c   : > { %780 = vrot.lane.b32.xlu0 %v763_v40, %s1442_s14  ;;  %821 = vrot.lane.b32.xlu1 %v806_v41, %s1443_s16 }
 0x330   : > { %823 = vrot.lane.b32.xlu0 %v807_v43, %s1443_s16  ;;  %860 = vrot.lane.b32.xlu1 %v848_v44, %s1444_s17 }
 0x334   : > { %862 = vrot.lane.b32.xlu0 %v849_v45, %s1444_s17  ;;  %864 = vrot.lane.b32.xlu1 %v850_v46, %s1444_s17 }
 0x338   : > { %868 = vrot.lane.b32.xlu0 %v852_v48, %s1444_s17  ;;  %825 = vrot.lane.b32.xlu1 %v808_v49, %s1443_s16  ;;  %v697_v48 = vmul.f32 %v693_v61, %v1659_v14 }
 0x33c   : > { %866 = vrot.lane.b32.xlu1 %v851_v52, %s1444_s17  ;;  %907 = vrot.lane.b32.xlu0 %v894_v51, %s1445_s21 }
 0x340   : > { %870 = vrot.lane.b32.xlu0 %v853_v54, %s1444_s17  ;;  %905 = vrot.lane.b32.xlu1 %v893_v53, %s1445_s21 }
 0x344   : > { %909 = vrot.lane.b32.xlu1 %v895_v56, %s1445_s21  ;;  %913 = vrot.lane.b32.xlu0 %v897_v57, %s1445_s21 }
 0x348   : > { %911 = vrot.lane.b32.xlu1 %v896_v58, %s1445_s21 }
 0x34c   : > { %915 = vrot.lane.b32.xlu1 %v898_v59, %s1445_s21  ;;  %v698_v59 = vmul.f32 %v693_v61, %v1664_v20  ;;  %v946_v20 = vstv %s1224_s22 }
 0x382   : > { %v728_v0 = vpop.permute.xlu0 %727  ;;  %v726_v1 = vpop.permute.xlu1 %725 }
 0x383   : > { %v738_v30 = vsel %vm737_vm8, %v726_v1, %v728_v0 }
 0x384   : > { %v746_v36 = vadd.f32 %v738_v30, %v695_v31 }
 0x386   : > { %v732_v5 = vpop.permute.xlu0 %731  ;;  %v730_v8 = vpop.permute.xlu1 %729 }
 0x387   : > { %v739_v32 = vsel %vm737_vm8, %v728_v0, %v730_v8 }
 0x388   : > { %v747_v44 = vadd.f32 %v739_v32, %v696_v39 }
 0x38a   : > { %v771_v9 = vpop.permute.xlu0 %770  ;;  %v734_v11 = vpop.permute.xlu1 %733 }
 0x38b   : > { %v740_v46 = vsel %vm737_vm8, %v732_v5, %v734_v11 }
 0x38c   : > { %v748_v54 = vadd.f32 %v740_v46, %v697_v48 }
 0x38e   : > { %v775_v12 = vpop.permute.xlu0 %774  ;;  %v773_v15 = vpop.permute.xlu1 %772 }
 0x38f   : > { %v783_v35 = vsel %vm782_vm9, %v771_v9, %v773_v15  ;;  %v784_v43 = vsel %vm782_vm9, %v773_v15, %v775_v12 }
 0x390   : > { %v791_v40 = vadd.f32 %v783_v35, %v746_v36  ;;  %v792_v49 = vadd.f32 %v784_v43, %v747_v44 }
 0x392   : > { %v777_v16 = vpop.permute.xlu0 %776  ;;  %v736_v18 = vpop.permute.xlu1 %735 }
 0x393   : > { %v741_v55 = vsel %vm737_vm8, %v734_v11, %v736_v18 }
 0x394   : > { %v749_v8 = vadd.f32 %v741_v55, %v698_v59 }
 0x396   : > { %v816_v19 = vpop.permute.xlu0 %815  ;;  %v779_v21 = vpop.permute.xlu1 %778 }
 0x397   : > { %v785_v51 = vsel %vm782_vm9, %v777_v16, %v779_v21 }
 0x398   : > { %v793_v14 = vadd.f32 %v785_v51, %v748_v54 }
 0x39a   : > { %v820_v22 = vpop.permute.xlu0 %819  ;;  %v818_v25 = vpop.permute.xlu1 %817 }
 0x39b   : > { %v828_v37 = vsel %vm827_vm10, %v816_v19, %v818_v25  ;;  %v829_v47 = vsel %vm827_vm10, %v818_v25, %v820_v22 }
 0x39c   : > { %v836_v45 = vadd.f32 %v828_v37, %v791_v40  ;;  %v837_v56 = vadd.f32 %v829_v47, %v792_v49 }
 0x39e   : > { %v781_v23 = vpop.permute.xlu0 %780  ;;  %v822_v24 = vpop.permute.xlu1 %821 }
 0x39f   : > { %v786_v0 = vsel %vm782_vm9, %v779_v21, %v781_v23 }
 0x3a0   : > { %v794_v19 = vadd.f32 %v786_v0, %v749_v8 }
 0x3a2   : > { %v824_v26 = vpop.permute.xlu0 %823  ;;  %v861_v27 = vpop.permute.xlu1 %860 }
 0x3a3   : > { %v830_v60 = vsel %vm827_vm10, %v822_v24, %v824_v26 }
 0x3a4   : > { %v838_v15 = vadd.f32 %v830_v60, %v793_v14 }
 0x3a6   : > { %v863_v28 = vpop.permute.xlu0 %862  ;;  %v865_v29 = vpop.permute.xlu1 %864 }
 0x3a7   : > { %v873_v6 = vsel %vm872_vm11, %v861_v27, %v863_v28  ;;  %v874_v52 = vsel %vm872_vm11, %v863_v28, %v865_v29 }
 0x3a8   : > { %v881_v50 = vadd.f32 %v873_v6, %v836_v45  ;;  %v882_v1 = vadd.f32 %v874_v52, %v837_v56 }
 0x3aa   : > { %v869_v33 = vpop.permute.xlu0 %868  ;;  %v826_v34 = vpop.permute.xlu1 %825 }
 0x3ab   : > { %v831_v11 = vsel %vm827_vm10, %v824_v26, %v826_v34  ;;  %v348_v26 = vld [vmem:[%s1797_s8] sm:$0x3] }
 0x3ac   : > { %v839_v23 = vadd.f32 %v831_v11, %v794_v19  ;;  %v963_v31 = vrot.slane %v348_v26, %v560_v17  ;;  %v959_v32 = vrot.slane %v348_v26, %v556_v13 }
 0x3ae   : > { %v908_v41 = vpop.permute.xlu0 %907  ;;  %v867_v42 = vpop.permute.xlu1 %866 }
 0x3af   : > { %v875_v9 = vsel %vm872_vm11, %v867_v42, %v869_v33 }
 0x3b0   : > { %v883_v61 = vadd.f32 %v875_v9, %v838_v15 }
 0x3b2   : > { %v906_v7 = vpop.permute.xlu1 %905  ;;  %v871_v57 = vpop.permute.xlu0 %870 }
 0x3b3   : > { %v918_v53 = vsel %vm917_vm12, %v906_v7, %v908_v41  ;;  %v876_v24 = vsel %vm872_vm11, %v869_v33, %v871_v57 }
 0x3b4   : > { %v926_v58 = vadd.f32 %v918_v53, %v881_v50  ;;  %v884_v34 = vadd.f32 %v876_v24, %v839_v23 }
 0x3b6   : > { %v910_v5 = vpop.permute.xlu1 %909  ;;  %v938_v16 = vadd.f32 %v1692_v63, %v926_v58  ;;  %v914_v22 = vpop.permute.xlu0 %913 }
 0x3b7   : > { %v919_v12 = vsel %vm917_vm12, %v908_v41, %v910_v5 }
 0x3b8   : > { %v927_v18 = vadd.f32 %v919_v12, %v882_v1  ;;  %v947_v28 = vmul.f32 %v946_v20, %v938_v16  ;;  %vm942_vm14 = vcmp.ge.f32.partialorder %v938_v16, 0.0 }
 0x3ba   : > { %v939_v25 = vadd.f32 %v1692_v63, %v927_v18  ;;  %v912_v21 = vpop.permute.xlu1 %911  ;;  %v951_v40 = vsel %vm942_vm14, %v938_v16, %v947_v28 }
 0x3bb   : > { %v920_v27 = vsel %vm917_vm12, %v912_v21, %v914_v22  ;;  %v966_v6 = vmul.f32 %v959_v32, %v951_v40 }
 0x3bc   : > { %vm943_vm13 = vcmp.ge.f32.partialorder %v939_v25, 0.0  ;;  %v948_v29 = vmul.f32 %v946_v20, %v939_v25  ;;  %v928_v30 = vadd.f32 %v920_v27, %v883_v61 }
 0x3be   : > { %v940_v63 = vadd.f32 %v1690_v62, %v928_v30  ;;  %v916_v35 = vpop.permute.xlu1 %915  ;;  %v952_v36 = vsel %vm943_vm13, %v939_v25, %v948_v29  ;;  %v1047_v25 = vld [vmem:[%s1795_s6] sm:$0xff] }
 0x3bf   : > { %v921_v33 = vsel %vm917_vm12, %v914_v22, %v916_v35  ;;  %v967_v41 = vmul.f32 %v963_v31, %v952_v36 }
 0x3c0   : > { %v949_v37 = vmul.f32 %v946_v20, %v940_v63  ;;  %v929_v39 = vadd.f32 %v921_v33, %v884_v34  ;;  %vm944_vm15 = vcmp.ge.f32.partialorder %v940_v63, 0.0 }
 0x3c1   : > { %v970_v45 = vadd.f32 %v967_v41, %v966_v6 }
 0x3c2   : > { %v941_v42 = vadd.f32 %v1690_v62, %v929_v39  ;;  %v953_v43 = vsel %vm944_vm15, %v940_v63, %v949_v37 }
 0x3c3   : > { %v968_v17 = vmul.f32 %v959_v32, %v953_v43 }
 0x3c4   : > { %vm945_vm0 = vcmp.ge.f32.partialorder %v941_v42, 0.0  ;;  %v950_v44 = vmul.f32 %v946_v20, %v941_v42 }
 0x3c5   : > { %v971_v48 = vadd.f32 %v970_v45, %v968_v17 }
 0x3c6   : > { %v954_v46 = vsel %vm945_vm0, %v941_v42, %v950_v44 }
 0x3c7   : > { %v969_v47 = vmul.f32 %v963_v31, %v954_v46 }
 0x3c9   : > { %v972_v49 = vadd.f32 %v971_v48, %v969_v47 }
 0x3cb   : > { %973 = vadd.xlane.f32.xlu0 %v972_v49 }
 0x3e1   : > { %1023 = vperm.xlu0 %1340, %v1571_v2  }
 0x3e5   : > { %1344 = vset.pattern.permute.xlu0 %v1435_v3 }
 0x458   : > { %v974_v10 = vpop.xlane.xlu0 %973 }
 0x459   : > { %v975_v13 = vrot.slane %v974_v10, 4 }
 0x45b   : > { %v976_v50 = vadd.f32 %v975_v13, %v974_v10 }
 0x45d   : > { %v977_v7 = vrot.slane %v976_v50, 2 }
 0x45f   : > { %v978_v62 = vadd.f32 %v977_v7, %v976_v50 }
 0x460   : > { %v1024_v23 = vpop.permute.xlu0 %1023 }
 0x461   : > { %v979_v51 = vrot.slane %v978_v62, 1 }
 0x463   : > { %v980_v52 = vadd.f32 %v979_v51, %v978_v62 }
 0x465   : > { %1258 = vpush %v980_v52 }
 0x496   : > { %s1259_s25 = spop %1258 }
 0x497   : > { %s984_s26 = smul.f32 0.000390625, %s1259_s25  ;;  %s1238_s25 = sshll.u32 %s1518_s13, 8 }
 0x499   : > { %v985_v53 = vstv %s984_s26  ;;  %s339_s26 = scalar_lea.vmem [#allocation6], %s1222_s24 }
 0x49a   : > { %v986_v54 = vsub.f32 %v951_v40, %v985_v53  ;;  %v987_v55 = vsub.f32 %v952_v36, %v985_v53  ;;  %v988_v56 = vsub.f32 %v953_v43, %v985_v53  ;;  %v989_v57 = vsub.f32 %v954_v46, %v985_v53  ;;  %v1046_v40 = vld [vmem:[%s1794_s5] sm:$0xff]  ;;  %s1145_s27 = sshll.u32 %s339_s26, 4  ;;  %s1749_s27 = int_to_ptr.vmem [resolvable:$true] %s1145_s27 }
 0x49b   : > { %s1365_s13 = scalar_lea.vmem %s1749_s27, 256 }
 0x49c   : > { %v990_v58 = vmul.f32 %v986_v54, %v959_v32  ;;  %v991_v59 = vmul.f32 %v987_v55, %v963_v31  ;;  %v992_v60 = vmul.f32 %v988_v56, %v959_v32  ;;  %v993_v14 = vmul.f32 %v989_v57, %v963_v31  ;;  %p1366_p9 = scmp.ne.s32.totalorder %s1749_s27, %s1365_s13 }
 0x49e   : > { %v994_v0 = vmul.f32 %v990_v58, %v990_v58  ;;  %v995_v1 = vmul.f32 %v991_v59, %v991_v59  ;;  %v996_v5 = vmul.f32 %v992_v60, %v992_v60  ;;  %v997_v9 = vmul.f32 %v993_v14, %v993_v14  ;;  %p1367_p10 = pnand %p1366_p9, %p1535_p5 }
 0x4a0   : > { %v998_v8 = vadd.f32 %v995_v1, %v994_v0  ;;  %p1368_p12 = pneg %p1367_p10 }
 0x4a2   : > { %v999_v12 = vadd.f32 %v998_v8, %v996_v5 }
 0x4a4   : > { %v1000_v15 = vadd.f32 %v999_v12, %v997_v9 }
 0x4a6   : > { %1001 = vadd.xlane.f32.xlu1 %v1000_v15 }
 0x4b7   : > { %1027 = vperm.xlu1 %1341, %v1579_v4  }
 0x4bb   : > { %1342 = vset.pattern.permute.xlu1 %v1440_v38 }
 0x4bc   : > { %1035 = vperm.xlu1 %1342, %v1571_v2  }
 0x4c0   : > { %1039 = vperm.xlu1 %1342, %v1579_v4  }
 0x4c4   : > { %1343 = vset.pattern.permute.xlu1 %v1435_v3 }
 0x4c5   : > { %1050 = vperm.xlu1 %1343, %v1047_v25  }
 0x533   : > { %v1002_v11 = vpop.xlane.xlu1 %1001 }
 0x534   : > { %v1003_v16 = vrot.slane %v1002_v11, 4 }
 0x536   : > { %v1004_v18 = vadd.f32 %v1003_v16, %v1002_v11 }
 0x537   : > { %v1028_v3 = vpop.permute.xlu1 %1027 }
 0x538   : > { %v1005_v19 = vrot.slane %v1004_v18, 2 }
 0x53a   : > { %v1006_v20 = vadd.f32 %v1005_v19, %v1004_v18 }
 0x53b   : > { %v1036_v38 = vpop.permute.xlu1 %1035 }
 0x53c   : > { %v1007_v61 = vrot.slane %v1006_v20, 1 }
 0x53e   : > { %v1008_v22 = vadd.f32 %v1007_v61, %v1006_v20 }
 0x53f   : > { %v1040_v63 = vpop.permute.xlu1 %1039 }
 0x540   : > { %1260 = vpush %v1008_v22 }
 0x544   : > { %v1051_v41 = vpop.permute.xlu1 %1050 }
 0x571   : > { %s1261_s29 = spop %1260 }
 0x572   : > { %s1012_s14 = smul.f32 0.000390625, %s1261_s29 }
 0x574   : > { %s1013_s16 = sadd.f32 1e-08, %s1012_s14  ;;  %s1747_s14 = scalar_lea.hbm %s1798_s9, %s1238_s25 }
 0x576   : > { %v1014_v2 = vstv %s1013_s16  ;;  %s1131_s16 = scalar_lea.sflag [#allocation4], %s337_s23 }
 0x577   : > { %1348 = vrsqrt.f32 %v1014_v2 }
 0x581   : > { %v1349_v4 = vpop.eup %1348 }
 0x582   : > { %1262 = vpush %v1349_v4 }
 0x5b3   : > { %s1263_s17 = spop %1262 }
 0x5b4   : > { %v1017_v21 = vstv %s1263_s17  ;;  %s1446_s17 = smov [#allocation6]  }
 0x5b5   : > { %v1020_v24 = vmul.f32 %v1017_v21, %v992_v60  ;;  %v1021_v27 = vmul.f32 %v1017_v21, %v993_v14  ;;  %v1018_v28 = vmul.f32 %v1017_v21, %v990_v58  ;;  %v1019_v29 = vmul.f32 %v1017_v21, %v991_v59  ;;  %s1369_s21 = sshll.u32 %s1446_s17, 4  ;;  %s1370_s21 = int_to_ptr.vmem [resolvable:$false] %s1369_s21 }
 0x5b6   : > { %s1371_s22 = scalar_lea.vmem %s1370_s21, 512  ;;  %p1372_p13 = scmp.lt.s32.totalorder %s1749_s27, %s1370_s21 }
 0x5b7   : > { %v1032_v30 = vmul.f32 %v1028_v3, %v1020_v24  ;;  %v1033_v26 = vmul.f32 %v1028_v3, %v1021_v27  ;;  %v1030_v31 = vmul.f32 %v1024_v23, %v1018_v28  ;;  %v1031_v34 = vmul.f32 %v1024_v23, %v1019_v29  ;;  %p1373_p0 = scmp.lt.s32.totalorder %s1371_s22, %s1365_s13 }
 0x5b9   : > { %v1044_v35 = vadd.f32 %v1040_v63, %v1032_v30  ;;  %v1045_v36 = vadd.f32 %v1040_v63, %v1033_v26  ;;  %v1042_v33 = vadd.f32 %v1036_v38, %v1030_v31  ;;  %v1043_v32 = vadd.f32 %v1036_v38, %v1031_v34  ;;  %p1374_p1 = por %p1373_p0, %p1372_p13 }
 0x5bb   : > { %v1249_v37 = vpack.c.bf16 %v1044_v35, %v1042_v33  ;;  %v1247_v39 = vpack.c.bf16 %v1045_v36, %v1043_v32  ;;  %p1375_p2 = pnand %p1374_p1, %p1368_p12 }
 0x5bd   : > { %1248 = vmatprep.subr.bf16.mxu1 %v1247_v39 }
 0x5be   : > { %1250 = vmatpush1.bf16.msra.mxu1 %v1249_v37 }
 0x5c1   : > { %1232 = vmatmul.mubr.msk.f32.vlgmr.msra.gmra.mrb[2].mxu1 %vm1053_vm1, %v1046_v40 }
 0x694   : > { %v1123_v42 = vpop.f32.mrb[2].mxu1 }
 0x695   : > { %v1124_v43 = vadd.f32 %v1123_v42, %v1051_v41  ;;  %v1125_v6 = vpop.f32.mrb[3].mxu1 }
 0x696   : > { %v1126_v17 = vadd.f32 %v1125_v6, %v1051_v41 }
 0x697   : > { %1128 = vst [vmem:[%s339_s26] sm:$0xff] %v1124_v43 }
 0x698   : > { %1129 = vst [vmem:[%s339_s26 + $0x8] sm:$0xff] %v1126_v17 }
 0x699   : > { %1378 = shalt.err (!%p1375_p2)
}
 0x69a   : > { %s1379_s23 = scalar_lea.hbm %s1747_s14, 256  ;;  %s1383_s26 = scalar_lea.hbm %s1798_s9, 512 }
 0x69b   : > { %p1380_p3 = scmp.ne.s32.totalorder %s1747_s14, %s1379_s23  ;;  %p1384_p8 = scmp.lt.u32.totalorder %s1747_s14, %s1798_s9 }
 0x69c   : > { %p1385_p11 = scmp.lt.u32.totalorder %s1383_s26, %s1379_s23  ;;  %p1387_p10 = scmp.lt.u32.totalorder %s1379_s23, %s1747_s14 }
 0x69d   : > { %p1381_p4 = pnand %p1380_p3, %p1535_p5 }
 0x69e   : > { %p1386_p9 = por %p1385_p11, %p1384_p8 }
 0x69f   : > { %p1382_p7 = pneg %p1381_p4 }
 0x6a0   : > { %p1388_p12 = por %p1387_p10, %p1386_p9 }
 0x6a2   : > { %p1389_p13 = pnand %p1388_p12, %p1382_p7 }
 0x6a4   : > { %1392 = shalt.err (!%p1389_p13)
}
 0x6a5   : > { %1268 = dma.vmem_to_hbm [thread:$0]  (%p1535_p5), %s1749_s27, 256, %s1747_s14, %s1131_s16  }
 0x6a6 PF: > { %p1280_p0 = scmp.ge.s32.totalorder %s1431_s12, 2  ;;  %s1157_s13 = sand.u32 1, %s1419_s30  }
 0x6a7   : > { %s1158_s17 = scalar_lea.sflag [#allocation4], %s1157_s13 }
 0x6a8   : > { %p1275_p1 = pnand %p1280_p0, %p1539_p6 }
 0x6aa   : > { %1414 = dma.done.wait (!%p1275_p1), %s1158_s17, 256  }
 0x6ab   : > { %1416 = vsyncadd (!%p1275_p1), %s1158_s17, 4294967040  ;;  %p20_p2 = scmp.ge.s32.totalorder %s1522_s15, 4   ;;  %s1802_s30 = smov %s1423_s10 }
 0x6ac   : > { %s1803_s10 = smov %s1427_s11  ;;  %s1804_s11 = smov %s1533_s18 }
 0x6ad   : > { %s1805_s12 = smov %s1522_s15  ;;  %22 = sbr.rel (!%p20_p2) target bundleno = 4 (0x4), region = 96 }
 0x6b4   :  { %1163 = vsyncpa [#allocation4], 1 }
 0x6b5   :  { %1165 = vsyncpa [#allocation4 + $0x1], 1 }
 0x6b6   :  { %1166 = vsyncpa [#allocation5], 1 }
 0x6b7   :  { %1168 = vsyncpa [#allocation5 + $0x1], 1 }

</bundles_post_ra>
